<compile_context>
chip_gen: v7x
topology: tpu7x:2x2x1
jax: 0.10.0
libtpu: 0.0.40
codegen_flags: <defaults>
</compile_context>

<pallas_src>
import jax
import jax.numpy as jnp
from jax.experimental import pallas as pl
from jax.experimental.pallas import tpu as pltpu

HIDDEN_1 = 10
HIDDEN_2 = 3
OUTPUT_SIZE = 1

TILE_B_MAX = 8192   # rows per grid step (8192 * 6 * 4B ~= 192 KiB per x tile)
SUBLANE = 8         # f32 sublane granularity


def mlp_kernel(x_ref, w1_ref, b1_ref, w2_ref, b2_ref, w3_ref, b3_ref, o_ref):
    # fc1 + relu
    h1 = jnp.dot(x_ref[...], w1_ref[...], preferred_element_type=jnp.float32)
    h1 = jnp.maximum(h1 + b1_ref[...], 0.0)
    # fc2 + relu
    h2 = jnp.dot(h1, w2_ref[...], preferred_element_type=jnp.float32)
    h2 = jnp.maximum(h2 + b2_ref[...], 0.0)
    # fc3
    y = jnp.dot(h2, w3_ref[...], preferred_element_type=jnp.float32)
    o_ref[...] = (y + b3_ref[...]).astype(o_ref.dtype)


def _round_up(n, m):
    return (n + m - 1) // m * m


def simple_regressor_forward(x, params, tile_b_max=TILE_B_MAX):
    """x: (batch, input_size) float32. params: dict of weights/biases."""
    w1, b1, w2, b2, w3, b3 = (params["w1"], params["b1"], params["w2"],
                              params["b2"], params["w3"], params["b3"])
    batch, input_size = x.shape

    # Tile over the batch; pad batch so every block is full and (8,*)-aligned.
    tile_b = min(tile_b_max, _round_up(batch, SUBLANE))
    padded = _round_up(batch, tile_b)
    if padded != batch:
        x = jnp.pad(x, ((0, padded - batch), (0, 0)))

    grid = (padded // tile_b,)

    # Grid-invariant (resident) operands: constant block index across the grid.
    def resident(a):
        return pl.BlockSpec(a.shape, lambda i: (0, 0))

    out = pl.pallas_call(
        mlp_kernel,
        out_shape=jax.ShapeDtypeStruct((padded, OUTPUT_SIZE), jnp.float32),
        grid=grid,
        in_specs=[
            pl.BlockSpec((tile_b, input_size), lambda i: (i, 0)),  # streamed x
            resident(w1), resident(b1),
            resident(w2), resident(b2),
            resident(w3), resident(b3),
        ],
        out_specs=pl.BlockSpec((tile_b, OUTPUT_SIZE), lambda i: (i, 0)),
        compiler_params=pltpu.CompilerParams(
            dimension_semantics=("parallel",)),
    )(x, w1, b1, w2, b2, w3, b3)

    return out[:batch]


def init_params(key, input_size):
    """Deterministic init mimicking nn.Linear's uniform(-1/sqrt(fan_in), +1/sqrt(fan_in))."""
    def linear(k, fan_in, fan_out):
        kw, kb = jax.random.split(k)
        bound = 1.0 / jnp.sqrt(jnp.float32(fan_in))
        w = jax.random.uniform(kw, (fan_in, fan_out), jnp.float32, -bound, bound)
        b = jax.random.uniform(kb, (1, fan_out), jnp.float32, -bound, bound)
        return w, b

    k1, k2, k3 = jax.random.split(key, 3)
    w1, b1 = linear(k1, input_size, HIDDEN_1)
    w2, b2 = linear(k2, HIDDEN_1, HIDDEN_2)
    w3, b3 = linear(k3, HIDDEN_2, OUTPUT_SIZE)
    return dict(w1=w1, b1=b1, w2=w2, b2=b2, w3=w3, b3=b3)


def reference_forward(x, p):
    h1 = jnp.maximum(x @ p["w1"] + p["b1"], 0.0)
    h2 = jnp.maximum(h1 @ p["w2"] + p["b2"], 0.0)
    return h2 @ p["w3"] + p["b3"]


if __name__ == "__main__":
    input_size = 6  # number of feature columns after dropping the target column
    key = jax.random.PRNGKey(0)
    kx, kp, kx2 = jax.random.split(key, 3)
    params = init_params(kp, input_size)

    # Small, sublane-aligned batch.
    batch = 8
    x = jax.random.normal(kx, (batch, input_size), dtype=jnp.float32)
    y = jax.block_until_ready(simple_regressor_forward(x, params))
    y_ref = reference_forward(x, params)
    assert y.shape == (batch, OUTPUT_SIZE)
    assert jnp.allclose(y, y_ref, atol=1e-5, rtol=1e-5)

    # Non-multiple-of-8 batch to exercise the padding/slice path.
    batch2 = 37
    x2 = jax.random.normal(kx2, (batch2, input_size), dtype=jnp.float32)
    y2 = jax.block_until_ready(simple_regressor_forward(x2, params))
    y2_ref = reference_forward(x2, params)
    assert y2.shape == (batch2, OUTPUT_SIZE)
    assert jnp.allclose(y2, y2_ref, atol=1e-5, rtol=1e-5)

    print("KERNEL_OK")
</pallas_src>

<mosaic_0001>
module attributes {stable_mosaic.version = 11 : i64} {
  func.func @mlp_kernel(%arg0: i32, %arg1: memref<8x6xf32, #tpu.memory_space<vmem>>, %arg2: memref<6x10xf32, #tpu.memory_space<vmem>>, %arg3: memref<1x10xf32, #tpu.memory_space<vmem>>, %arg4: memref<10x3xf32, #tpu.memory_space<vmem>>, %arg5: memref<1x3xf32, #tpu.memory_space<vmem>>, %arg6: memref<3x1xf32, #tpu.memory_space<vmem>>, %arg7: memref<1x1xf32, #tpu.memory_space<vmem>>, %arg8: memref<8x1xf32, #tpu.memory_space<vmem>>) attributes {dimension_semantics = [#tpu.dimension_semantics<parallel>], iteration_bounds = array<i64: 1>, scalar_prefetch = 0 : i64, scratch_operands = 0 : i64, tpu.core_type = #tpu.core_type<tc>, window_params = [{transform_indices = @transform_0, window_bounds = array<i64: 8, 6>}, {pipeline_mode = #tpu.pipeline_mode<synchronous>, transform_indices = @transform_1, window_bounds = array<i64: 6, 10>}, {pipeline_mode = #tpu.pipeline_mode<synchronous>, transform_indices = @transform_2, window_bounds = array<i64: 1, 10>}, {pipeline_mode = #tpu.pipeline_mode<synchronous>, transform_indices = @transform_3, window_bounds = array<i64: 10, 3>}, {pipeline_mode = #tpu.pipeline_mode<synchronous>, transform_indices = @transform_4, window_bounds = array<i64: 1, 3>}, {pipeline_mode = #tpu.pipeline_mode<synchronous>, transform_indices = @transform_5, window_bounds = array<i64: 3, 1>}, {pipeline_mode = #tpu.pipeline_mode<synchronous>, transform_indices = @transform_6, window_bounds = array<i64: 1, 1>}, {transform_indices = @transform_7, window_bounds = array<i64: 8, 1>}]} {
    %c0 = arith.constant 0 : index
    %c0_0 = arith.constant 0 : index
    %0 = vector.load %arg1[%c0, %c0_0] : memref<8x6xf32, #tpu.memory_space<vmem>>, vector<8x6xf32>
    %c0_1 = arith.constant 0 : index
    %c0_2 = arith.constant 0 : index
    %1 = vector.load %arg2[%c0_1, %c0_2] : memref<6x10xf32, #tpu.memory_space<vmem>>, vector<6x10xf32>
    %cst = arith.constant dense<0.000000e+00> : vector<8x10xf32>
    %2 = tpu.matmul %0, %1, %cst {dimension_numbers = #tpu.dot_dimension_numbers<[1], [0], [0], [1], [0, 0, 1, 1], [], []>} : vector<8x6xf32>, vector<6x10xf32>, vector<8x10xf32> -> vector<8x10xf32>
    %c0_3 = arith.constant 0 : index
    %c0_4 = arith.constant 0 : index
    %3 = vector.load %arg3[%c0_3, %c0_4] : memref<1x10xf32, #tpu.memory_space<vmem>>, vector<1x10xf32>
    %4 = vector.broadcast %3 : vector<1x10xf32> to vector<8x10xf32>
    %5 = arith.addf %2, %4 : vector<8x10xf32>
    %cst_5 = arith.constant 0.000000e+00 : f32
    %6 = vector.broadcast %cst_5 : f32 to vector<8x10xf32>
    %7 = arith.maximumf %5, %6 : vector<8x10xf32>
    %c0_6 = arith.constant 0 : index
    %c0_7 = arith.constant 0 : index
    %8 = vector.load %arg4[%c0_6, %c0_7] : memref<10x3xf32, #tpu.memory_space<vmem>>, vector<10x3xf32>
    %cst_8 = arith.constant dense<0.000000e+00> : vector<8x3xf32>
    %9 = tpu.matmul %7, %8, %cst_8 {dimension_numbers = #tpu.dot_dimension_numbers<[1], [0], [0], [1], [0, 0, 1, 1], [], []>} : vector<8x10xf32>, vector<10x3xf32>, vector<8x3xf32> -> vector<8x3xf32>
    %c0_9 = arith.constant 0 : index
    %c0_10 = arith.constant 0 : index
    %10 = vector.load %arg5[%c0_9, %c0_10] : memref<1x3xf32, #tpu.memory_space<vmem>>, vector<1x3xf32>
    %11 = vector.broadcast %10 : vector<1x3xf32> to vector<8x3xf32>
    %12 = arith.addf %9, %11 : vector<8x3xf32>
    %cst_11 = arith.constant 0.000000e+00 : f32
    %13 = vector.broadcast %cst_11 : f32 to vector<8x3xf32>
    %14 = arith.maximumf %12, %13 : vector<8x3xf32>
    %c0_12 = arith.constant 0 : index
    %c0_13 = arith.constant 0 : index
    %15 = vector.load %arg6[%c0_12, %c0_13] : memref<3x1xf32, #tpu.memory_space<vmem>>, vector<3x1xf32>
    %cst_14 = arith.constant dense<0.000000e+00> : vector<8x1xf32>
    %16 = tpu.matmul %14, %15, %cst_14 {dimension_numbers = #tpu.dot_dimension_numbers<[1], [0], [0], [1], [0, 0, 1, 1], [], []>} : vector<8x3xf32>, vector<3x1xf32>, vector<8x1xf32> -> vector<8x1xf32>
    %c0_15 = arith.constant 0 : index
    %c0_16 = arith.constant 0 : index
    %17 = vector.load %arg7[%c0_15, %c0_16] : memref<1x1xf32, #tpu.memory_space<vmem>>, vector<1x1xf32>
    %18 = vector.broadcast %17 : vector<1x1xf32> to vector<8x1xf32>
    %19 = arith.addf %16, %18 : vector<8x1xf32>
    %c0_17 = arith.constant 0 : index
    %c0_18 = arith.constant 0 : index
    %20 = vector.load %arg8[%c0_17, %c0_18] : memref<8x1xf32, #tpu.memory_space<vmem>>, vector<8x1xf32>
    tpu.vector_store %arg8[%c0_17, %c0_18], %19 {strides = array<i32>} : memref<8x1xf32, #tpu.memory_space<vmem>>, vector<8x1xf32>,
    return
  }
  func.func @transform_0(%arg0: i32) -> (i32, i32) {
    %c0_i32 = arith.constant 0 : i32
    %c0_i32_0 = arith.constant 0 : i32
    return %arg0, %c0_i32 : i32, i32
  }
  func.func @transform_1(%arg0: i32) -> (i32, i32) {
    %c0_i32 = arith.constant 0 : i32
    %c0_i32_0 = arith.constant 0 : i32
    %c0_i32_1 = arith.constant 0 : i32
    return %c0_i32, %c0_i32_0 : i32, i32
  }
  func.func @transform_2(%arg0: i32) -> (i32, i32) {
    %c0_i32 = arith.constant 0 : i32
    %c0_i32_0 = arith.constant 0 : i32
    %c0_i32_1 = arith.constant 0 : i32
    return %c0_i32, %c0_i32_0 : i32, i32
  }
  func.func @transform_3(%arg0: i32) -> (i32, i32) {
    %c0_i32 = arith.constant 0 : i32
    %c0_i32_0 = arith.constant 0 : i32
    %c0_i32_1 = arith.constant 0 : i32
    return %c0_i32, %c0_i32_0 : i32, i32
  }
  func.func @transform_4(%arg0: i32) -> (i32, i32) {
    %c0_i32 = arith.constant 0 : i32
    %c0_i32_0 = arith.constant 0 : i32
    %c0_i32_1 = arith.constant 0 : i32
    return %c0_i32, %c0_i32_0 : i32, i32
  }
  func.func @transform_5(%arg0: i32) -> (i32, i32) {
    %c0_i32 = arith.constant 0 : i32
    %c0_i32_0 = arith.constant 0 : i32
    %c0_i32_1 = arith.constant 0 : i32
    return %c0_i32, %c0_i32_0 : i32, i32
  }
  func.func @transform_6(%arg0: i32) -> (i32, i32) {
    %c0_i32 = arith.constant 0 : i32
    %c0_i32_0 = arith.constant 0 : i32
    %c0_i32_1 = arith.constant 0 : i32
    return %c0_i32, %c0_i32_0 : i32, i32
  }
  func.func @transform_7(%arg0: i32) -> (i32, i32) {
    %c0_i32 = arith.constant 0 : i32
    %c0_i32_0 = arith.constant 0 : i32
    return %arg0, %c0_i32 : i32, i32
  }
}

</mosaic_0001>

<bundles_post_ra>
// kernel: tpu_custom_call.1
= control target key start
LH: loop header
LB: loop body
LE: loop exit
PB: predicated region body
PF: predicated region fallthrough
CT: control target
= control target key end

     0   :  { %vm41_vm0 = vcmask 1045504   ;;  %vm37_vm1 = vcmask 48128   ;;  %v337_v0 = vmov 0.0   ;;  %vm338_vm2 = vmmov 0   ;;  %s408_s1 = inlined_call_operand.vmem [shape: f32[6,10], index: 1, kind: input, shape index: {}]   ;;  %s409_s0 = inlined_call_operand.vmem [shape: f32[8,6], index: 0, kind: input, shape index: {}]   ;;  %s410_s3 = inlined_call_operand.vmem [shape: f32[10,3], index: 3, kind: input, shape index: {}]   ;;  %s411_s2 = inlined_call_operand.vmem [shape: f32[1,10], index: 2, kind: input, shape index: {}]   ;;  %s412_s5 = inlined_call_operand.vmem [shape: f32[3,1], index: 5, kind: input, shape index: {}]   ;;  %s413_s6 = inlined_call_operand.<no memory space> [shape: f32[1,1], index: 6, kind: input, shape index: {}]   ;;  %s414_s4 = inlined_call_operand.vmem [shape: f32[1,3], index: 4, kind: input, shape index: {}]   ;;  %s415_s7 = inlined_call_operand.vmem [shape: f32[8,1], index: 7, kind: output, shape index: {}]  }
   0x1   :  { %312 = vmatprep.subr.mxu0 %v337_v0  ;;  %v29_v1 = vld [vmem:[%s408_s1] sm:$0x3f]  ;;  %314 = vmatprep.mubr.msk.f32.mxu0 %vm338_vm2, %v337_v0  ;;  %v117_v4 = vld [vmem:[%s410_s3 + $0x8] sm:$0x3]  ;;  %vm129_vm3 = vcmask 1041408   ;;  %v339_v6 = vmov 0.0|0.0   ;;  %v12_v13 = vstv %s413_s6 }
   0x2   :  { %v28_v2 = vld [vmem:[%s409_s0] sm:$0xff]  ;;  %313 = vmatpush3.msk.msra.mxu0 %vm41_vm0, %v29_v1  ;;  %321 = vmatprep.mubr.msk.f32.mxu1 %vm338_vm2, %v337_v0  ;;  %vm340_vm4 = vmmov 1   ;;  %vm125_vm6 = vcmask 80896   ;;  %vm216_vm7 = vcmask 1042432   ;;  %13 = vst [vmem:[#allocation2] sm:$0x1] %v12_v13 }
   0x3   :  { %315 = vmatmul.mubr.msk.f32.vlgmr.msra.gmra.mrb[0].mxu0 %vm37_vm1, %v28_v2  ;;  %324 = vmatprep.subr.mxu0 %v337_v0  ;;  %v116_v3 = vld [vmem:[%s410_s3] sm:$0xff]  ;;  %vm331_vm5 = vmpackc.low %vm129_vm3, %vm340_vm4  ;;  %vm212_vm8 = vcmask 23552   ;;  %vm290_vm9 = vcmask 7168  }
   0x4   :  { %326 = vmatprep.mubr.msk.f32.mxu0 %vm338_vm2, %v337_v0  ;;  %v330_v5 = vpack.c.bf16 %v117_v4, %v116_v3  ;;  %329 = vmatprep.subr.bf16.mxu1 %v339_v6  ;;  %v296_v7 = vld [vmem:[%s411_s2] ss:$0 sm:$0xff] }
   0x5   :  { %v204_v12 = vld [vmem:[%s412_s5] sm:$0x7] }
   0x6   :  { %332 = vmatpush3.bf16.msk.msra.mxu1 %vm331_vm5, %v330_v5  ;;  %325 = vmatpush3.msk.msra.mxu0 %vm216_vm7, %v204_v12  ;;  %v299_v14 = vld [vmem:[%s414_s4] ss:$0 sm:$0xff] }
   0x9   :  { %v302_v19 = vld [vmem:[#allocation2] ss:$0 sm:$0xff] }
  0xd6   :  { %v111_v8 = vpop.f32.mrb[0].mxu0 }
  0xd7   :  { %v112_v9 = vadd.f32 %v296_v7, %v111_v8  ;;  %v316_v10 = vpop.f32.mrb[1].mxu0 }
  0xd9   :  { %v115_v11 = vmax.f32 %v112_v9, 0.0 }
  0xdb   :  { %322 = vmatmul.mubr.msk.f32.vlgmr.msra.gmra.mrb[0].mxu1 %vm125_vm6, %v115_v11 }
 0x1ae   :  { %v199_v15 = vpop.f32.mrb[0].mxu1 }
 0x1af   :  { %v200_v16 = vadd.f32 %v299_v14, %v199_v15  ;;  %v323_v17 = vpop.f32.mrb[1].mxu1 }
 0x1b1   :  { %v203_v18 = vmax.f32 %v200_v16, 0.0 }
 0x1b3   :  { %327 = vmatmul.mubr.msk.f32.vlgmr.msra.gmra.mrb[2].mxu0 %vm212_vm8, %v203_v18 }
 0x286   :  { %v286_v20 = vpop.f32.mrb[2].mxu0 }
 0x287   :  { %v287_v21 = vadd.f32 %v302_v19, %v286_v20  ;;  %v328_v22 = vpop.f32.mrb[3].mxu0 }
 0x289   :  { %291 = vst.msk [vmem:[%s415_s7] sm:$0xff] %vm290_vm9, %v287_v21 }

</bundles_post_ra>
